<compile_context>
chip_gen: v5e
topology: v5e:2x2
jax: 0.10.0
libtpu: 0.0.40
codegen_flags: <defaults>
</compile_context>

<pallas_src>
import numpy as np
import jax
import jax.numpy as jnp
from jax.experimental import pallas as pl
from jax.experimental.pallas import tpu as pltpu


def _pair(v):
    return (v, v) if isinstance(v, int) else tuple(v)


# ---------------------------------------------------------------------------
# Pallas kernel: fused (W @ X) * scale + bias, output laid out (Cout, M).
# ---------------------------------------------------------------------------
def _conv_int_kernel(w_ref, x_ref, s_ref, b_ref, o_ref):
    acc = jnp.dot(w_ref[...], x_ref[...], preferred_element_type=jnp.float32)
    o_ref[...] = (acc * s_ref[...] + b_ref[...]).astype(o_ref.dtype)


def _pick_tile_m(m_padded, kc, cout, in_itemsize):
    """Largest M tile (multiple of 128) that divides m_padded, keeps live VMEM
    blocks well under v7x's budget (64 MiB phys / 32 MiB scoped) and, when
    possible, gives grid extent >= 2 so both v7x TensorCores get work."""
    budget = 20 * 1024 * 1024
    divisors = []
    for cand in (2048, 1024, 512, 256, 128):
        if m_padded % cand:
            continue
        live = (2 * kc * cand * in_itemsize      # X blocks (double-buffered)
                + 2 * cout * cand * 4            # out blocks (double-buffered)
                + kc * cout * in_itemsize        # resident weight block
                + 4 * cout * 8)                  # scale / bias
        if live <= budget:
            divisors.append(cand)
    if not divisors:
        return 128
    multi = [d for d in divisors if m_padded // d >= 2]
    return multi[0] if multi else divisors[0]


def _fused_matmul_scale_bias(w2, x2, scale, bias):
    """out(Cout, Mp) = (w2 @ x2) * scale[:, None] + bias[:, None] -- 1 call."""
    cout, kc = w2.shape
    kc2, m_padded = x2.shape
    assert kc == kc2 and m_padded % 128 == 0
    tm = _pick_tile_m(m_padded, kc, cout, x2.dtype.itemsize)
    grid = (m_padded // tm,)

    flops = 2 * cout * kc * m_padded
    bytes_accessed = (w2.size * w2.dtype.itemsize
                      + x2.size * x2.dtype.itemsize
                      + (scale.size + bias.size) * 4
                      + cout * m_padded * 4)

    return pl.pallas_call(
        _conv_int_kernel,
        out_shape=jax.ShapeDtypeStruct((cout, m_padded), jnp.float32),
        grid_spec=pltpu.PrefetchScalarGridSpec(
            num_scalar_prefetch=0,
            grid=grid,
            in_specs=[
                pl.BlockSpec((cout, kc), lambda i: (0, 0)),  # weights (grid-invariant)
                pl.BlockSpec((kc, tm), lambda i: (0, i)),    # activations, M-tiled
                pl.BlockSpec((cout, 1), lambda i: (0, 0)),   # scale
                pl.BlockSpec((cout, 1), lambda i: (0, 0)),   # bias
            ],
            out_specs=pl.BlockSpec((cout, tm), lambda i: (0, i)),
        ),
        compiler_params=pltpu.CompilerParams(
            dimension_semantics=("parallel",),
            vmem_limit_bytes=32 * 1024 * 1024,
        ),
        cost_estimate=pl.CostEstimate(flops=int(flops), transcendentals=0,
                                      bytes_accessed=int(bytes_accessed)),
    )(w2, x2, scale.reshape(cout, 1), bias.reshape(cout, 1))


# ---------------------------------------------------------------------------
# Wrapper-side layout plumbing (pure reshape/transpose/slice, no compute).
# ---------------------------------------------------------------------------
def _pack_weight(w, groups, cin, compute_dtype):
    """(Cout, Cin/groups, KH, KW) -> block-diagonal (Cout, KH*KW*Cin) so all
    groups are computed by ONE matmul (no per-group pallas_call + concat)."""
    cout, cin_g, kh, kw = w.shape
    w_t = jnp.transpose(w, (0, 2, 3, 1))                    # (Cout, KH, KW, Cin_g)
    if groups == 1:
        w_full = w_t
    else:
        cout_g = cout // groups
        w_full = jnp.zeros((cout, kh, kw, cin), w.dtype)
        for g in range(groups):
            w_full = w_full.at[g * cout_g:(g + 1) * cout_g, :, :,
                               g * cin_g:(g + 1) * cin_g].set(
                w_t[g * cout_g:(g + 1) * cout_g])
    return w_full.reshape(cout, kh * kw * cin).astype(compute_dtype)


def _im2col(xp, ksize, stride, dilation, out_hw, compute_dtype):
    """Padded NCHW input -> (KH*KW*Cin, N*Ho*Wo) patch matrix (lane axis = M)."""
    n, cin, _, _ = xp.shape
    kh_sz, kw_sz = ksize
    sh, sw = stride
    dh, dw = dilation
    ho, wo = out_hw
    cols = []
    for kh in range(kh_sz):
        for kw in range(kw_sz):
            h0, w0 = kh * dh, kw * dw
            patch = jax.lax.slice(
                xp, (0, 0, h0, w0),
                (n, cin, h0 + (ho - 1) * sh + 1, w0 + (wo - 1) * sw + 1),
                (1, 1, sh, sw))                             # (N, Cin, Ho, Wo)
            cols.append(patch)
    xc = jnp.stack(cols, axis=0)                            # (KH*KW, N, Cin, Ho, Wo)
    xc = jnp.transpose(xc, (0, 2, 1, 3, 4))                 # (KH*KW, Cin, N, Ho, Wo)
    return xc.reshape(kh_sz * kw_sz * cin, n * ho * wo).astype(compute_dtype)


def conv2d_int(x, w, scale, bias, *, stride=1, padding=0, dilation=1, groups=1,
               compute_dtype=jnp.bfloat16):
    """Conv2D_INT forward: conv2d(x, w, bias=False) * scale + bias  (NCHW)."""
    n, cin, h, width = x.shape
    cout, cin_g, kh, kw = w.shape
    assert cin_g * groups == cin and cout % groups == 0
    sh, sw = _pair(stride)
    ph, pw = _pair(padding)
    dh, dw = _pair(dilation)
    ho = (h + 2 * ph - dh * (kh - 1) - 1) // sh + 1
    wo = (width + 2 * pw - dw * (kw - 1) - 1) // sw + 1

    xp = jnp.pad(x.astype(jnp.float32), ((0, 0), (0, 0), (ph, ph), (pw, pw)))
    x2 = _im2col(xp, (kh, kw), (sh, sw), (dh, dw), (ho, wo), compute_dtype)
    w2 = _pack_weight(w, groups, cin, compute_dtype)

    m = n * ho * wo
    m_padded = ((m + 127) // 128) * 128
    if m_padded != m:
        x2 = jnp.pad(x2, ((0, 0), (0, m_padded - m)))

    out2 = _fused_matmul_scale_bias(w2, x2,
                                    scale.astype(jnp.float32),
                                    bias.astype(jnp.float32))      # (Cout, Mp)
    out2 = out2[:, :m].reshape(cout, n, ho, wo)
    return jnp.transpose(out2, (1, 0, 2, 3))                       # NCHW


# ---------------------------------------------------------------------------
# Pure-JAX reference (matches the PyTorch module) for correctness checking.
# ---------------------------------------------------------------------------
def conv2d_int_reference(x, w, scale, bias, *, stride=1, padding=0,
                         dilation=1, groups=1):
    sh, sw = _pair(stride)
    ph, pw = _pair(padding)
    dh, dw = _pair(dilation)
    y = jax.lax.conv_general_dilated(
        x, w, window_strides=(sh, sw), padding=((ph, ph), (pw, pw)),
        rhs_dilation=(dh, dw), feature_group_count=groups,
        dimension_numbers=("NCHW", "OIHW", "NCHW"))
    return y * scale.reshape(1, -1, 1, 1) + bias.reshape(1, -1, 1, 1)


def _check(name, out, ref, tol=5e-2):
    out = np.asarray(out)
    ref = np.asarray(ref)
    assert out.shape == ref.shape, (name, out.shape, ref.shape)
    assert np.all(np.isfinite(out)), name
    err = np.max(np.abs(out - ref)) / (np.max(np.abs(ref)) + 1e-6)
    assert err < tol, (name, float(err))


if __name__ == "__main__":
    key = jax.random.PRNGKey(0)
    kx, kw1, ks1, kb1, kw2, ks2, kb2 = jax.random.split(key, 7)

    # Input (NCHW, PyTorch layout).
    n, cin, h, w = 2, 16, 16, 16
    x = jax.random.normal(kx, (n, cin, h, w), jnp.float32)

    # --- Test 1: 3x3 conv, stride 1, 'same' padding, groups=1 ----------------
    cout1, k1 = 32, 3
    w1 = jax.random.normal(kw1, (cout1, cin, k1, k1), jnp.float32) / np.sqrt(cin * k1 * k1)
    s1 = 1.0 + 0.1 * jax.random.normal(ks1, (cout1,), jnp.float32)
    b1 = 0.1 * jax.random.normal(kb1, (cout1,), jnp.float32)
    out1 = jax.block_until_ready(conv2d_int(x, w1, s1, b1, stride=1, padding=1))
    _check("3x3", out1, conv2d_int_reference(x, w1, s1, b1, stride=1, padding=1))

    # --- Test 2: grouped 1x1 conv (MixNet GroupConv split), block-diag fused --
    cout2, groups2 = 48, 4
    w2_ = jax.random.normal(kw2, (cout2, cin // groups2, 1, 1),
                            jnp.float32) / np.sqrt(cin // groups2)
    s2 = 1.0 + 0.1 * jax.random.normal(ks2, (cout2,), jnp.float32)
    b2 = 0.1 * jax.random.normal(kb2, (cout2,), jnp.float32)
    out2 = jax.block_until_ready(conv2d_int(x, w2_, s2, b2, groups=groups2))
    _check("grouped-1x1", out2,
           conv2d_int_reference(x, w2_, s2, b2, groups=groups2))

    # --- Test 3: strided 3x3 (stride 2), reuse test-1 parameters --------------
    out3 = jax.block_until_ready(conv2d_int(x, w1, s1, b1, stride=2, padding=1))
    _check("3x3-s2", out3,
           conv2d_int_reference(x, w1, s1, b1, stride=2, padding=1))

    print("KERNEL_OK")
</pallas_src>

<mosaic_0001>
module attributes {stable_mosaic.version = 11 : i64} {
  func.func @_conv_int_kernel(%arg0: i32, %arg1: memref<32x144xbf16, #tpu.memory_space<vmem>>, %arg2: memref<144x256xbf16, #tpu.memory_space<vmem>>, %arg3: memref<32x1xf32, #tpu.memory_space<vmem>>, %arg4: memref<32x1xf32, #tpu.memory_space<vmem>>, %arg5: memref<32x256xf32, #tpu.memory_space<vmem>>) attributes {dimension_semantics = [#tpu.dimension_semantics<parallel>], iteration_bounds = array<i64: 2>, scalar_prefetch = 0 : i64, scratch_operands = 0 : i64, tpu.core_type = #tpu.core_type<tc>, window_params = [{pipeline_mode = #tpu.pipeline_mode<synchronous>, transform_indices = @transform_0, window_bounds = array<i64: 32, 144>}, {transform_indices = @transform_1, window_bounds = array<i64: 144, 256>}, {pipeline_mode = #tpu.pipeline_mode<synchronous>, transform_indices = @transform_2, window_bounds = array<i64: 32, 1>}, {pipeline_mode = #tpu.pipeline_mode<synchronous>, transform_indices = @transform_3, window_bounds = array<i64: 32, 1>}, {transform_indices = @transform_4, window_bounds = array<i64: 32, 256>}]} {
    %c0 = arith.constant 0 : index
    %c0_0 = arith.constant 0 : index
    %0 = vector.load %arg1[%c0, %c0_0] : memref<32x144xbf16, #tpu.memory_space<vmem>>, vector<32x144xbf16>
    %c0_1 = arith.constant 0 : index
    %c0_2 = arith.constant 0 : index
    %1 = vector.load %arg2[%c0_1, %c0_2] : memref<144x256xbf16, #tpu.memory_space<vmem>>, vector<144x256xbf16>
    %cst = arith.constant dense<0.000000e+00> : vector<32x256xf32>
    %2 = tpu.matmul %0, %1, %cst {dimension_numbers = #tpu.dot_dimension_numbers<[1], [0], [0], [1], [0, 0, 1, 1], [], []>} : vector<32x144xbf16>, vector<144x256xbf16>, vector<32x256xf32> -> vector<32x256xf32>
    %c0_3 = arith.constant 0 : index
    %c0_4 = arith.constant 0 : index
    %3 = vector.load %arg3[%c0_3, %c0_4] : memref<32x1xf32, #tpu.memory_space<vmem>>, vector<32x1xf32>
    %4 = vector.broadcast %3 : vector<32x1xf32> to vector<32x256xf32>
    %5 = arith.mulf %2, %4 : vector<32x256xf32>
    %c0_5 = arith.constant 0 : index
    %c0_6 = arith.constant 0 : index
    %6 = vector.load %arg4[%c0_5, %c0_6] : memref<32x1xf32, #tpu.memory_space<vmem>>, vector<32x1xf32>
    %7 = vector.broadcast %6 : vector<32x1xf32> to vector<32x256xf32>
    %8 = arith.addf %5, %7 : vector<32x256xf32>
    %c0_7 = arith.constant 0 : index
    %c0_8 = arith.constant 0 : index
    %9 = vector.load %arg5[%c0_7, %c0_8] : memref<32x256xf32, #tpu.memory_space<vmem>>, vector<32x256xf32>
    tpu.vector_store %arg5[%c0_7, %c0_8], %8 {strides = array<i32>} : memref<32x256xf32, #tpu.memory_space<vmem>>, vector<32x256xf32>,
    return
  }
  func.func @transform_0(%arg0: i32) -> (i32, i32) {
    %c0_i32 = arith.constant 0 : i32
    %c0_i32_0 = arith.constant 0 : i32
    %c0_i32_1 = arith.constant 0 : i32
    return %c0_i32, %c0_i32_0 : i32, i32
  }
  func.func @transform_1(%arg0: i32) -> (i32, i32) {
    %c0_i32 = arith.constant 0 : i32
    %c0_i32_0 = arith.constant 0 : i32
    return %c0_i32, %arg0 : i32, i32
  }
  func.func @transform_2(%arg0: i32) -> (i32, i32) {
    %c0_i32 = arith.constant 0 : i32
    %c0_i32_0 = arith.constant 0 : i32
    %c0_i32_1 = arith.constant 0 : i32
    return %c0_i32, %c0_i32_0 : i32, i32
  }
  func.func @transform_3(%arg0: i32) -> (i32, i32) {
    %c0_i32 = arith.constant 0 : i32
    %c0_i32_0 = arith.constant 0 : i32
    %c0_i32_1 = arith.constant 0 : i32
    return %c0_i32, %c0_i32_0 : i32, i32
  }
  func.func @transform_4(%arg0: i32) -> (i32, i32) {
    %c0_i32 = arith.constant 0 : i32
    %c0_i32_0 = arith.constant 0 : i32
    return %c0_i32, %arg0 : i32, i32
  }
}

</mosaic_0001>

<bundles_post_ra>
// kernel: tpu_custom_call.1
= control target key start
LH: loop header
LB: loop body
LE: loop exit
PB: predicated region body
PF: predicated region fallthrough
CT: control target
= control target key end

     0   :  { %9 = vsyncpa [#allocation3], 0  ;;  %s1132_s0 = inlined_call_operand.vmem [shape: bf16[32,144], index: 0, kind: input, shape index: {}]   ;;  %s1133_s1 = inlined_call_operand.hbm [shape: bf16[144,512], index: 1, kind: input, shape index: {}]   ;;  %s1134_s2 = inlined_call_operand.vmem [shape: f32[32,1], index: 2, kind: input, shape index: {}]   ;;  %s1135_s3 = inlined_call_operand.vmem [shape: f32[32,1], index: 3, kind: input, shape index: {}]   ;;  %s1136_s4 = inlined_call_operand.hbm [shape: f32[32,512], index: 4, kind: output, shape index: {}]  }
   0x1   :  { %11 = vsyncpa [#allocation3 + $0x1], 0 }
   0x2   :  { %12 = vsyncpa [#allocation4], 0 }
   0x3   :  { %14 = vsyncpa [#allocation4 + $0x1], 0  ;;  %s911_s15 = smov 0   ;;  %s913_s16 = smov 0  }
   0x4   :  { %s915_s17 = smov 0   ;;  %s917_s18 = smov 0  }
   0x5 LB: > { %s932_s19 = sadd.s32 4294967295, %s877_s18   ;;  %s595_s20 = sadd.s32 4294967294, %s877_s18   ;;  %s877_s18 = sphi %s917_s18, %s1144_s18   ;;  %s873_s17 = sphi %s915_s17, %s1143_s17   ;;  %s869_s16 = sphi %s913_s16, %s1142_s16   ;;  %s865_s15 = sphi %s911_s15, %s1141_s15  }
   0x6   : > { %s936_s21 = sadd.s32 1, %s877_s18   ;;  %s48_s22 = sadd.s32 1, %s873_s17 }
   0x7   : > { %s45_s23 = ssub.s32 %s877_s18, %s936_s21  ;;  %p55_p0 = scmp.ne.s32.totalorder %s873_s17, %s869_s16 }
   0x8   : > { %p46_p1 = scmp.eq.s32.totalorder %s45_s23, 0  ;;  %p56_p2 = scmp.eq.s32.totalorder %s877_s18, 0 }
   0x9   : > { %p61_p3 = scmp.ne.s32.totalorder %s869_s16, %s865_s15  ;;  %p62_p4 = scmp.eq.s32.totalorder %s932_s19, 0 }
   0xa   : > { %s948_s24 = scalar_select %p46_p1, %s873_s17, %s48_s22  }
   0xb   : > { %p57_p5 = por %p56_p2, %p55_p0  ;;  %p950_p6 = por %p62_p4, %p61_p3 }
   0xc   : > { %p127_p7 = scmp.eq.s32.totalorder %s932_s19, 1  ;;  %p133_p8 = scmp.eq.s32.totalorder %s595_s20, 1 }
   0xd   : > { %p597_p9 = scmp.ge.s32.totalorder %s877_s18, 2  ;;  %p737_p10 = scmp.lt.s32.totalorder %s877_s18, 2 }
   0xe   : > { %p957_p11 = por %p127_p7, %p55_p0  ;;  %p961_p12 = por %p133_p8, %p61_p3 }
   0xf   : > { %s162_s28 = sand.u32 1, %s873_s17   ;;  %s699_s29 = sshll.u32 %s877_s18, 3 }
  0x10   : > { %s723_s30 = smul.u32 144, %s162_s28  ;;  %s171_s7 = scalar_lea.hbm %s1133_s1, %s699_s29 }
  0x11   : > { %p970_p13 = pnand %p737_p10, %p57_p5  ;;  %s172_s9 = sshll.u32 %s171_s7, 4  ;;  %s173_s9 = int_to_ptr.hbm [resolvable:$true] %s172_s9 }
  0x12   : > { %s166_s10 = scalar_lea.vmem [#allocation2], %s723_s30  ;;  %p600_p0 = scmp.ge.s32.totalorder %s877_s18, 1 }
  0x13   : > { %s174_s11 = sshll.u32 %s166_s10, 4  ;;  %s163_s12 = scalar_lea.sflag [#allocation3], %s162_s28  ;;  %s175_s11 = int_to_ptr.vmem [resolvable:$true] %s174_s11 }
  0x14   : > { %s781_s13 = sshra.s32 %s173_s9, 4  ;;  %p785_p2 = pneg %p970_p13  ;;  %s782_s13 = int_to_ptr.hbm [resolvable:$true] %s781_s13 }
  0x15   : > { %s783_s14 = scalar_lea.hbm %s782_s13, 144  ;;  %s788_s23 = scalar_lea.hbm %s1133_s1, 288 }
  0x16   : > { %p784_p1 = scmp.ne.s32.totalorder %s782_s13, %s783_s14  ;;  %p789_p5 = scmp.lt.s32.totalorder %s782_s13, %s1133_s1 }
  0x17   : > { %p790_p7 = scmp.lt.s32.totalorder %s788_s23, %s783_s14 }
  0x18   : > { %p786_p3 = pnand %p785_p2, %p784_p1 }
  0x19   : > { %p791_p8 = por %p790_p7, %p789_p5 }
  0x1a   : > { %p787_p4 = pneg %p786_p3 }
  0x1c   : > { %p792_p10 = pnand %p791_p8, %p787_p4 }
  0x1e   : > { %795 = shalt.err (!%p792_p10)
}
  0x1f   : > { %s879_s28 = smov 256   ;;  %s880_s30 = smov 128  }
  0x20   : > { %s881_s6 = smov 8   ;;  %p182_p1 = scmp.lt.s32.totalorder %s877_s18, 3 }
  0x21   : > { %732 = dma.hbm_to_vmem [thread:$0]  (!%p970_p13), %s173_s9, 2304, %s175_s11, %s163_s12, %s879_s28, %s880_s30, %s881_s6  }
  0x22   : > { %p183_p2 = pnand %p600_p0, %p182_p1 }
  0x23   : > { %s989_s7 = sand.u32 (!%p183_p2), 1, %s869_s16  }
  0x24   : > { %186 = sbr.rel (%p183_p2) target bundleno = 244 (0xf4), region = 36  ;;  %s189_s13 = scalar_lea.sflag (!%p183_p2), [#allocation3], %s989_s7 }
  0x25   : > { %s724_s10 = smul.u32 (!%p183_p2), 144, %s989_s7 }
  0x27   : > { %s993_s14 = scalar_lea.vmem (!%p183_p2), [#allocation2], %s724_s10 }
  0x29   : > { %856 = dma.done.wait (%p950_p6), %s189_s13, 2304  }
  0x2a   : > { %858 = vsyncadd (%p950_p6), %s189_s13, 4294964992  ;;  %v676_v0 = vld [vmem:[%s993_s14 + $0x70] sm:$0xf]  ;;  %v719_v1 = vld [vmem:[%s993_s14 + $0x74] sm:$0xf0]  ;;  %vm351_vm0 = vcmask 130048  }
  0x2b   : > { %v718_v2 = vld [vmem:[%s993_s14 + $0x74] sm:$0xf]  ;;  %v677_v3 = vor.u32 %v719_v1, %v676_v0  ;;  %v678_v4 = vld [vmem:[%s993_s14 + $0x78] sm:$0xf0]  ;;  %v668_v5 = vld [vmem:[%s993_s14 + $0x60] sm:$0xf] }
  0x2c   : > { %v717_v6 = vld [vmem:[%s993_s14 + $0x64] sm:$0xf0]  ;;  %v681_v7 = vor.u32 %v718_v2, %v678_v4  ;;  %v716_v8 = vld [vmem:[%s993_s14 + $0x64] sm:$0xf]  ;;  %v670_v9 = vld [vmem:[%s993_s14 + $0x68] sm:$0xf0] }
  0x2d   : > { %358 = vmatpush.bf16.msra.mxu0 %v677_v3  ;;  %v669_v10 = vor.u32 %v717_v6, %v668_v5  ;;  %v673_v11 = vor.u32 %v716_v8, %v670_v9  ;;  %v660_v12 = vld [vmem:[%s993_s14 + $0x50] sm:$0xf]  ;;  %v715_v13 = vld [vmem:[%s993_s14 + $0x54] sm:$0xf0]  ;;  %v714_v14 = vld [vmem:[%s993_s14 + $0x54] sm:$0xf] }
  0x2e   : > { %396 = vmatpush.bf16.msra.mxu2 %v681_v7  ;;  %v662_v15 = vld [vmem:[%s993_s14 + $0x58] sm:$0xf0]  ;;  %v661_v16 = vor.u32 %v715_v13, %v660_v12  ;;  %v652_v17 = vld [vmem:[%s993_s14 + $0x40] sm:$0xf]  ;;  %v713_v18 = vld [vmem:[%s993_s14 + $0x44] sm:$0xf0] }
  0x2f   : > { %v665_v19 = vor.u32 %v714_v14, %v662_v15  ;;  %v720_v20 = vld [vmem:[%s993_s14 + $0x84] sm:$0xf]  ;;  %v686_v21 = vld [vmem:[%s993_s14 + $0x88] sm:$0xf0]  ;;  %v684_v28 = vld [vmem:[%s993_s14 + $0x80] sm:$0xf]  ;;  %v653_v29 = vor.u32 %v713_v18, %v652_v17 }
  0x30   : > { %v700_v22 = vld [vmem:[%s1132_s0 + $0x4] sm:$0xf]  ;;  %v654_v24 = vld [vmem:[%s993_s14 + $0x48] sm:$0xf0]  ;;  %v689_v25 = vor.u32 %v720_v20, %v686_v21  ;;  %v721_v30 = vld [vmem:[%s993_s14 + $0x84] sm:$0xf0] }
  0x31   : > { %359 = vmatpush.bf16.msra.mxu0 %v669_v10  ;;  %v712_v23 = vld [vmem:[%s993_s14 + $0x44] sm:$0xf]  ;;  %v606_v26 = vld [vmem:[%s1132_s0 + $0x8] sm:$0xf0]  ;;  %v644_v32 = vld [vmem:[%s993_s14 + $0x30] sm:$0xf]  ;;  %v685_v34 = vor.u32 %v721_v30, %v684_v28 }
  0x32   : > { %397 = vmatpush.bf16.msra.mxu2 %v673_v11  ;;  %v609_v27 = vor.u32 %v700_v22, %v606_v26  ;;  %422 = vmatpush.bf16.msra.mxu3 %v689_v25  ;;  %v657_v31 = vor.u32 %v712_v23, %v654_v24  ;;  %v711_v33 = vld [vmem:[%s993_s14 + $0x34] sm:$0xf0]  ;;  %v710_v35 = vld [vmem:[%s993_s14 + $0x34] sm:$0xf]  ;;  %v646_v36 = vld [vmem:[%s993_s14 + $0x38] sm:$0xf0] }
  0x33   : > { %384 = vmatpush.bf16.msra.mxu1 %v685_v34  ;;  %v436_v37 = vld [vmem:[%s1134_s2 + $0x10] sm:$0xff]  ;;  %v645_v38 = vor.u32 %v711_v33, %v644_v32  ;;  %v882_v39 = vmov 0   ;;  %v434_v40 = vld [vmem:[%s1134_s2] sm:$0xff]  ;;  %v649_v41 = vor.u32 %v710_v35, %v646_v36  ;;  %v709_v43 = vld [vmem:[%s993_s14 + $0x24] sm:$0xf0]  ;;  %s601_s8 = sshll.u32 %s989_s7, 6 }
  0x34   : > { %779 = vset.pattern.permute.xlu1 %v882_v39  ;;  %v636_v42 = vld [vmem:[%s993_s14 + $0x20] sm:$0xf]  ;;  %778 = vset.pattern.permute.xlu0 %v882_v39  ;;  %v708_v44 = vld [vmem:[%s993_s14 + $0x24] sm:$0xf]  ;;  %v638_v45 = vld [vmem:[%s993_s14 + $0x28] sm:$0xf0] }
  0x35   : > { %360 = vmatpush.bf16.msra.mxu0 %v661_v16  ;;  %692 = vmatmul.msk.bf16.vlgmr.msra.gmra.mxu3 %vm351_vm0, %v609_v27  ;;  %v637_v46 = vor.u32 %v709_v43, %v636_v42  ;;  %v641_v47 = vor.u32 %v708_v44, %v638_v45  ;;  %v628_v48 = vld [vmem:[%s993_s14 + $0x10] sm:$0xf]  ;;  %v707_v49 = vld [vmem:[%s993_s14 + $0x14] sm:$0xf0]  ;;  %v706_v51 = vld [vmem:[%s993_s14 + $0x14] sm:$0xf] }
  0x36   : > { %398 = vmatpush.bf16.msra.mxu2 %v665_v19  ;;  %690 = vmatmul.msk.bf16.vlgmr.msra.gmra.mxu1 %vm351_vm0, %v609_v27  ;;  %v466_v50 = vld [vmem:[%s1135_s3] sm:$0xff]  ;;  %v630_v52 = vld [vmem:[%s993_s14 + $0x18] sm:$0xf0]  ;;  %v629_v54 = vor.u32 %v707_v49, %v628_v48  ;;  %v702_v55 = vld [vmem:[%s1132_s0 + $0x14] sm:$0xf]  ;;  %s1088_s9 = scalar_lea.vmem [#allocation5], %s601_s8 }
  0x37   : > { %450 = vperm.xlu1 %779, %v436_v37   ;;  %440 = vperm.xlu0 %778, %v434_v40   ;;  %v437_v53 = vld [vmem:[%s1134_s2 + $0x18] sm:$0xff]  ;;  %v435_v57 = vld [vmem:[%s1134_s2 + $0x8] sm:$0xff]  ;;  %v633_v58 = vor.u32 %v706_v51, %v630_v52  ;;  %v620_v59 = vld [vmem:[%s993_s14] sm:$0xf]  ;;  %s722_s11 = sshll.u32 %s932_s19, 4  ;;  %s519_s23 = sshll.u32 %s1088_s9, 4  ;;  %s520_s23 = int_to_ptr.vmem [resolvable:$true] %s519_s23 }
  0x38   : > { %780 = vset.pattern.permute.xlu2 %v882_v39  ;;  %v614_v56 = vld [vmem:[%s1132_s0 + $0x18] sm:$0xf0]  ;;  %v705_v60 = vld [vmem:[%s993_s14 + $0x4] sm:$0xf0]  ;;  %v704_v61 = vld [vmem:[%s993_s14 + $0x4] sm:$0xf]  ;;  %s518_s22 = scalar_lea.hbm %s1136_s4, %s722_s11 }
  0x39   : > { %361 = vmatpush.bf16.msra.mxu0 %v653_v29  ;;  %472 = vperm.xlu2 %780, %v466_v50   ;;  %v622_v62 = vld [vmem:[%s993_s14 + $0x8] sm:$0xf0]  ;;  %v617_v63 = vor.u32 %v702_v55, %v614_v56  ;;  %v621_v1 = vor.u32 %v705_v60, %v620_v59  ;;  %v604_v2 = vld [vmem:[%s1132_s0] sm:$0xf]  ;;  %v701_v3 = vld [vmem:[%s1132_s0 + $0x4] sm:$0xf0] }
  0x3a   : > { %399 = vmatpush.bf16.msra.mxu2 %v657_v31  ;;  %v467_v0 = vld [vmem:[%s1135_s3 + $0x8] sm:$0xff]  ;;  %v625_v4 = vor.u32 %v704_v61, %v622_v62  ;;  %v605_v5 = vor.u32 %v701_v3, %v604_v2  ;;  %v469_v6 = vld [vmem:[%s1135_s3 + $0x18] sm:$0xff]  ;;  %v468_v7 = vld [vmem:[%s1135_s3 + $0x10] sm:$0xff]  ;;  %s521_s29 = sshll.u32 %s518_s22, 4  ;;  %s507_s19 = scalar_lea.sflag [#allocation4], %s989_s7  ;;  %s522_s29 = int_to_ptr.hbm [resolvable:$true] %s521_s29 }
  0x3b   : > { %v612_v8 = vld [vmem:[%s1132_s0 + $0x10] sm:$0xf]  ;;  %v703_v9 = vld [vmem:[%s1132_s0 + $0x14] sm:$0xf0]  ;;  %s825_s14 = sshra.s32 %s522_s29, 4  ;;  %s831_s6 = scalar_lea.hbm %s1136_s4, 128  ;;  %s826_s14 = int_to_ptr.hbm [resolvable:$true] %s825_s14 }
  0x3c   : > { %v613_v10 = vor.u32 %v703_v9, %v612_v8  ;;  %s827_s5 = scalar_lea.hbm %s826_s14, 64  ;;  %p832_p3 = scmp.lt.s32.totalorder %s826_s14, %s1136_s4 }
  0x3d   : > { %362 = vmatpush.bf16.msra.mxu0 %v645_v38  ;;  %p828_p6 = scmp.ne.s32.totalorder %s826_s14, %s827_s5  ;;  %p833_p4 = scmp.lt.s32.totalorder %s831_s6, %s827_s5 }
  0x3e   : > { %400 = vmatpush.bf16.msra.mxu2 %v649_v41 }
  0x3f   : > { %455 = vperm.xlu1 %779, %v437_v53   ;;  %445 = vperm.xlu0 %778, %v435_v57   ;;  %p829_p13 = pnand %p828_p6, %p957_p11  ;;  %p834_p5 = por %p833_p4, %p832_p3 }
  0x41   : > { %363 = vmatpush.bf16.msra.mxu0 %v637_v46  ;;  %477 = vperm.xlu2 %780, %v467_v0   ;;  %p830_p0 = pneg %p829_p13 }
  0x42   : > { %401 = vmatpush.bf16.msra.mxu2 %v641_v47 }
  0x43   : > { %p835_p7 = pnand %p834_p5, %p830_p0 }
  0x45   : > { %364 = vmatpush.bf16.msra.mxu0 %v629_v54  ;;  %693 = vmatmul.msk.bf16.gmra.mxu3 %vm351_vm0, %v617_v63 }
  0x46   : > { %402 = vmatpush.bf16.msra.mxu2 %v633_v58  ;;  %691 = vmatmul.msk.bf16.gmra.mxu1 %vm351_vm0, %v617_v63 }
  0x47   : > { %487 = vperm.xlu1 %779, %v469_v6   ;;  %482 = vperm.xlu0 %778, %v468_v7  }
  0x49   : > { %365 = vmatpush.bf16.msra.mxu0 %v621_v1 }
  0x4a   : > { %403 = vmatpush.bf16.msra.mxu2 %v625_v4 }
  0x4c   : > { %366 = vmatmul.bf16.vlgmr.msra.gmra.mxu0 %v605_v5 }
  0x4d   : > { %404 = vmatmul.bf16.vlgmr.msra.gmra.mxu2 %v605_v5 }
  0x5c   : > { %371 = vmatmul.bf16.gmra.mxu0 %v613_v10 }
  0x5d   : > { %409 = vmatmul.bf16.gmra.mxu2 %v613_v10 }
  0x93   : > { %v473_v14 = vpop.permute.xlu2 %472 }
  0x9b   : > { %v478_v27 = vpop.permute.xlu2 %477 }
  0xa9   : > { %v441_v12 = vpop.permute.xlu0 %440  ;;  %v451_v20 = vpop.permute.xlu1 %450 }
  0xb1   : > { %v446_v24 = vpop.permute.xlu0 %445  ;;  %v456_v37 = vpop.permute.xlu1 %455 }
  0xb3   : > { %v386_v11 = vpop.f32.mrf.mxu1 }
  0xb8   : > { %v424_v15 = vpop.f32.mrf.mxu3 }
  0xb9   : > { %v483_v41 = vpop.permute.xlu0 %482  ;;  %v488_v51 = vpop.permute.xlu1 %487 }
  0xbb   : > { %v388_v18 = vpop.f32.mrf.mxu1 }
  0xc0   : > { %v426_v28 = vpop.f32.mrf.mxu3 }
  0xc3   : > { %v391_v32 = vpop.f32.mrf.mxu1 }
  0xc8   : > { %v429_v42 = vpop.f32.mrf.mxu3 }
  0xc9   : > { %v367_v13 = vpop.f32.mrf.mxu0 }
  0xca   : > { %v387_v16 = vadd.f32 %v386_v11, %v367_v13 }
  0xcb   : > { %v393_v45 = vpop.f32.mrf.mxu1 }
  0xcc   : > { %v458_v17 = vmul.f32 %v441_v12, %v387_v16 }
  0xce   : > { %v490_v19 = vadd.f32 %v473_v14, %v458_v17 }
  0xd0   : > { %498 = vst [vmem:[%s1088_s9] sm:$0xff] %v490_v19  ;;  %v405_v21 = vpop.f32.mrf.mxu2  ;;  %v431_v54 = vpop.f32.mrf.mxu3 }
  0xd1   : > { %v425_v22 = vadd.f32 %v424_v15, %v405_v21  ;;  %v369_v23 = vpop.f32.mrf.mxu0 }
  0xd2   : > { %v389_v25 = vadd.f32 %v388_v18, %v369_v23 }
  0xd3   : > { %v459_v26 = vmul.f32 %v441_v12, %v425_v22 }
  0xd4   : > { %v460_v29 = vmul.f32 %v446_v24, %v389_v25 }
  0xd5   : > { %v491_v30 = vadd.f32 %v473_v14, %v459_v26 }
  0xd6   : > { %v492_v31 = vadd.f32 %v478_v27, %v460_v29 }
  0xd7   : > { %499 = vst [vmem:[%s1088_s9 + $0x8] sm:$0xff] %v491_v30 }
  0xd8   : > { %500 = vst [vmem:[%s1088_s9 + $0x10] sm:$0xff] %v492_v31  ;;  %v407_v33 = vpop.f32.mrf.mxu2 }
  0xd9   : > { %v427_v34 = vadd.f32 %v426_v28, %v407_v33  ;;  %v372_v35 = vpop.f32.mrf.mxu0 }
  0xda   : > { %v392_v36 = vadd.f32 %v391_v32, %v372_v35 }
  0xdb   : > { %v461_v38 = vmul.f32 %v446_v24, %v427_v34 }
  0xdc   : > { %v462_v39 = vmul.f32 %v451_v20, %v392_v36 }
  0xdd   : > { %v493_v40 = vadd.f32 %v478_v27, %v461_v38 }
  0xde   : > { %v494_v43 = vadd.f32 %v483_v41, %v462_v39 }
  0xdf   : > { %501 = vst [vmem:[%s1088_s9 + $0x18] sm:$0xff] %v493_v40 }
  0xe0   : > { %502 = vst [vmem:[%s1088_s9 + $0x20] sm:$0xff] %v494_v43  ;;  %v410_v44 = vpop.f32.mrf.mxu2 }
  0xe1   : > { %v430_v46 = vadd.f32 %v429_v42, %v410_v44  ;;  %v374_v47 = vpop.f32.mrf.mxu0 }
  0xe2   : > { %v394_v48 = vadd.f32 %v393_v45, %v374_v47 }
  0xe3   : > { %v463_v49 = vmul.f32 %v451_v20, %v430_v46 }
  0xe4   : > { %v464_v50 = vmul.f32 %v456_v37, %v394_v48 }
  0xe5   : > { %v495_v52 = vadd.f32 %v483_v41, %v463_v49 }
  0xe6   : > { %v496_v53 = vadd.f32 %v488_v51, %v464_v50 }
  0xe7   : > { %503 = vst [vmem:[%s1088_s9 + $0x28] sm:$0xff] %v495_v52 }
  0xe8   : > { %504 = vst [vmem:[%s1088_s9 + $0x30] sm:$0xff] %v496_v53  ;;  %v412_v55 = vpop.f32.mrf.mxu2 }
  0xe9   : > { %v432_v56 = vadd.f32 %v431_v54, %v412_v55 }
  0xeb   : > { %v465_v57 = vmul.f32 %v456_v37, %v432_v56 }
  0xed   : > { %v497_v58 = vadd.f32 %v488_v51, %v465_v57 }
  0xef   : > { %505 = vst [vmem:[%s1088_s9 + $0x38] sm:$0xff] %v497_v58 }
  0xf0   : > { %838 = shalt.err (!%p835_p7)
}
  0xf1   : > { %s883_s7 = smov 256   ;;  %s884_s25 = smov 512  }
  0xf2   : > { %s885_s8 = smov 16  }
  0xf3   : > { %727 = dma.vmem_to_hbm [thread:$0]  (%p957_p11), %s520_s23, 1024, %s522_s29, %s507_s19, %s883_s7, %s884_s25, %s885_s8  }
  0xf4 PF: > { %s536_s9 = sand.u32 1, %s865_s15   ;;  %p734_p8 = pnand %p597_p9, %p961_p12 }
  0xf5   : > { %s537_s11 = scalar_lea.sflag [#allocation4], %s536_s9 }
  0xf6   : > { %p735_p10 = pneg %p734_p8 }
  0xf8   : > { %860 = dma.done.wait (%p735_p10), %s537_s11, 1024  }
  0xf9   : > { %862 = vsyncadd (%p735_p10), %s537_s11, 4294966272  ;;  %p17_p1 = scmp.ge.s32.totalorder %s936_s21, 4   ;;  %s1141_s15 = smov %s869_s16 }
  0xfa   : > { %s1142_s16 = smov %s873_s17  ;;  %s1143_s17 = smov %s948_s24 }
  0xfb   : > { %s1144_s18 = smov %s936_s21  ;;  %19 = sbr.rel (!%p17_p1) target bundleno = 5 (0x5), region = 81 }
 0x100   :  { %543 = vsyncpa [#allocation3], 1 }
 0x101   :  { %545 = vsyncpa [#allocation3 + $0x1], 1 }
 0x102   :  { %546 = vsyncpa [#allocation4], 1 }
 0x103   :  { %548 = vsyncpa [#allocation4 + $0x1], 1 }

</bundles_post_ra>
